<compile_context>
chip_gen: v6e
topology: v6e:2x2x1
jax: 0.10.0
libtpu: 0.0.40
codegen_flags: <defaults>
</compile_context>

<pallas_src>
import functools

import jax
import jax.numpy as jnp
from jax.experimental import pallas as pl
from jax.experimental.pallas import tpu as pltpu


def channel_attention_kernel(w1_ref, w2_ref, x_ref, o_ref, *, spatial_axis):
    # w1_ref: VMEM (C, hid)  f32  -- first 1x1 conv weight, transposed
    # w2_ref: VMEM (hid, C)  f32  -- second 1x1 conv weight, transposed
    # x_ref : VMEM (Bt, C, HW) or (Bt, HW, C), input dtype
    # o_ref : VMEM (Bt, 1, C), input dtype
    x = x_ref[...]
    bt = x.shape[0]
    c = o_ref.shape[-1]
    hw = x.shape[spatial_axis]
    inv_hw = 1.0 / hw

    # Global max / mean pooling over the spatial axis.  The sum uses an f32
    # accumulate dtype (no full-block f32 materialization for bf16 inputs);
    # the mean is a constant multiply, not a divide.
    max_p = jnp.max(x, axis=spatial_axis).astype(jnp.float32)           # (Bt, C)
    avg_p = jnp.sum(x, axis=spatial_axis, dtype=jnp.float32) * inv_hw   # (Bt, C)

    # Shared-weight squeeze-excite MLP (no bias).  Stack both pooled vectors
    # so the first conv is ONE MXU dot; the second conv is linear (no bias),
    # so it is applied once to (relu(W1 max) + relu(W1 avg)).
    pooled = jnp.concatenate([max_p, avg_p], axis=0)                     # (2Bt, C)
    h = jnp.maximum(
        jnp.dot(pooled, w1_ref[...], preferred_element_type=jnp.float32), 0.0)
    logits = jnp.dot(h[:bt] + h[bt:], w2_ref[...],
                     preferred_element_type=jnp.float32)                 # (Bt, C)

    o_ref[...] = jax.nn.sigmoid(logits).reshape(bt, 1, c).astype(o_ref.dtype)


def channel_attention(x, w1, w2, *, target_block_bytes=2 * 1024 * 1024,
                      min_grid_steps=4):
    """x: (B, C, H, W); w1: (C//r, C, 1, 1); w2: (C, C//r, 1, 1).
    Returns the attention map (B, C, 1, 1), matching the PyTorch forward."""
    B, C, H, W = x.shape
    hid = w1.shape[0]
    HW = H * W
    itemsize = jnp.dtype(x.dtype).itemsize

    # Keep the DMA'd last dim lane-dense: HW on lanes if it is a multiple of
    # 128 (or C isn't lane-friendly either); otherwise put C on lanes.
    spatial_last = (HW % 128 == 0) or (C % 128 != 0)
    if spatial_last:
        x3 = x.reshape(B, C, HW)            # reduce over axis 2
        spatial_axis = 2
        x_block = lambda bt: (bt, C, HW)
    else:
        x3 = x.reshape(B, C, HW).transpose(0, 2, 1)   # (B, HW, C), C on lanes
        spatial_axis = 1
        x_block = lambda bt: (bt, HW, C)

    w1_t = w1.reshape(hid, C).T.astype(jnp.float32)   # (C, hid)
    w2_t = w2.reshape(C, hid).T.astype(jnp.float32)   # (hid, C)

    # Batch rows per grid step: moderate (~2 MiB) input blocks already hit the
    # HBM roofline; additionally cap Bt so there are at least `min_grid_steps`
    # grid steps (megacore sharding on v7x + pipeline overlap).
    per_b = C * HW * itemsize
    bt_fit = max(1, target_block_bytes // per_b)
    bt_cap = pl.cdiv(B, min_grid_steps)
    Bt = int(max(1, min(B, bt_fit, bt_cap)))
    grid = (pl.cdiv(B, Bt),)

    # Explicit VMEM limit from the actual footprint + 2x headroom for Mosaic
    # internal scratch -- deterministic across per-generation scoped defaults.
    footprint = (2 * Bt * per_b                # input double-buffer
                 + 2 * 2 * C * hid * 4         # both weights, double-buffered
                 + 2 * Bt * C * itemsize       # output double-buffer
                 + 8 * Bt * C * 4)             # pooled / MLP f32 temps
    vmem_limit = int(min(96 * 1024 * 1024,
                         max(2 * footprint, 4 * 1024 * 1024)))

    # Purely HBM-streaming: tiny flops, 2*B*C sigmoid transcendentals.
    cost = pl.CostEstimate(
        flops=6 * B * C * hid + 2 * B * C,
        transcendentals=2 * B * C,
        bytes_accessed=B * C * HW * itemsize + B * C * itemsize
        + 2 * C * hid * 4)

    kernel = functools.partial(channel_attention_kernel,
                               spatial_axis=spatial_axis)

    out = pl.pallas_call(
        kernel,
        out_shape=jax.ShapeDtypeStruct((B, 1, C), x.dtype),
        grid=grid,
        in_specs=[
            pl.BlockSpec((C, hid), lambda i: (0, 0)),       # w1^T (resident)
            pl.BlockSpec((hid, C), lambda i: (0, 0)),       # w2^T (resident)
            pl.BlockSpec(x_block(Bt), lambda i: (i, 0, 0)),
        ],
        out_specs=pl.BlockSpec((Bt, 1, C), lambda i: (i, 0, 0)),
        compiler_params=pltpu.CompilerParams(
            dimension_semantics=("parallel",),
            vmem_limit_bytes=vmem_limit),
        cost_estimate=cost,
    )(w1_t, w2_t, x3)

    return out.reshape(B, C, 1, 1)


def channel_attention_ref(x, w1, w2):
    """Pure-JAX reference matching the PyTorch ChannelAttention module."""
    B, C, H, W = x.shape
    hid = w1.shape[0]
    w1m = w1.reshape(hid, C)
    w2m = w2.reshape(C, hid)

    max_r = jnp.max(x, axis=(2, 3))    # (B, C)
    avg_r = jnp.mean(x, axis=(2, 3))   # (B, C)

    def se(v):
        return jnp.maximum(v @ w1m.T, 0.0) @ w2m.T

    out = jax.nn.sigmoid(se(max_r) + se(avg_r))
    return out.reshape(B, C, 1, 1)


if __name__ == "__main__":
    key = jax.random.PRNGKey(0)
    kx, k1, k2 = jax.random.split(key, 3)

    # channel=64, reduction=16 -> hidden=4 (channel must be >= reduction).
    B, C, H, W = 2, 64, 16, 16
    reduction = 16
    hid = C // reduction

    x = jax.random.normal(kx, (B, C, H, W), dtype=jnp.float32)

    # Conv2d(C, C//r, 1, bias=False) and Conv2d(C//r, C, 1, bias=False) weights.
    b1 = 1.0 / (C ** 0.5)
    b2 = 1.0 / (hid ** 0.5)
    w1 = jax.random.uniform(k1, (hid, C, 1, 1), minval=-b1, maxval=b1,
                            dtype=jnp.float32)
    w2 = jax.random.uniform(k2, (C, hid, 1, 1), minval=-b2, maxval=b2,
                            dtype=jnp.float32)

    out = jax.block_until_ready(channel_attention(x, w1, w2))
    ref = jax.block_until_ready(channel_attention_ref(x, w1, w2))

    assert out.shape == (B, C, 1, 1), out.shape
    assert jnp.allclose(out, ref, atol=1e-5, rtol=1e-5), \
        float(jnp.max(jnp.abs(out - ref)))
    print("KERNEL_OK")
</pallas_src>

<mosaic_0001>
module attributes {stable_mosaic.version = 11 : i64} {
  func.func @channel_attention_kernel(%arg0: i32, %arg1: memref<64x4xf32, #tpu.memory_space<vmem>>, %arg2: memref<4x64xf32, #tpu.memory_space<vmem>>, %arg3: memref<1x64x256xf32, #tpu.memory_space<vmem>>, %arg4: memref<1x1x64xf32, #tpu.memory_space<vmem>>) attributes {dimension_semantics = [#tpu.dimension_semantics<parallel>], iteration_bounds = array<i64: 2>, scalar_prefetch = 0 : i64, scratch_operands = 0 : i64, tpu.core_type = #tpu.core_type<tc>, window_params = [{pipeline_mode = #tpu.pipeline_mode<synchronous>, transform_indices = @transform_0, window_bounds = array<i64: 64, 4>}, {pipeline_mode = #tpu.pipeline_mode<synchronous>, transform_indices = @transform_1, window_bounds = array<i64: 4, 64>}, {transform_indices = @transform_2, window_bounds = array<i64: 1, 64, 256>}, {transform_indices = @transform_3, window_bounds = array<i64: 1, 1, 64>}]} {
    %c0 = arith.constant 0 : index
    %c0_0 = arith.constant 0 : index
    %c0_1 = arith.constant 0 : index
    %0 = vector.load %arg3[%c0, %c0_0, %c0_1] : memref<1x64x256xf32, #tpu.memory_space<vmem>>, vector<1x64x256xf32>
    %cst = arith.constant dense<0xFF800000> : vector<1x64xf32>
    %1 = vector.multi_reduction <maximumf>, %0, %cst [2] : vector<1x64x256xf32> to vector<1x64xf32>
    %cst_2 = arith.constant dense<0.000000e+00> : vector<1x64xf32>
    %2 = vector.multi_reduction <add>, %0, %cst_2 [2] : vector<1x64x256xf32> to vector<1x64xf32>
    %cst_3 = arith.constant 3.906250e-03 : f32
    %3 = vector.broadcast %cst_3 : f32 to vector<1x64xf32>
    %4 = arith.mulf %2, %3 : vector<1x64xf32>
    %5 = tpu.concatenate %1, %4 in 0 : vector<1x64xf32>, vector<1x64xf32> -> vector<2x64xf32>
    %c0_4 = arith.constant 0 : index
    %c0_5 = arith.constant 0 : index
    %6 = vector.load %arg1[%c0_4, %c0_5] : memref<64x4xf32, #tpu.memory_space<vmem>>, vector<64x4xf32>
    %cst_6 = arith.constant dense<0.000000e+00> : vector<2x4xf32>
    %7 = tpu.matmul %5, %6, %cst_6 {dimension_numbers = #tpu.dot_dimension_numbers<[1], [0], [0], [1], [0, 0, 1, 1], [], []>} : vector<2x64xf32>, vector<64x4xf32>, vector<2x4xf32> -> vector<2x4xf32>
    %cst_7 = arith.constant 0.000000e+00 : f32
    %8 = vector.broadcast %cst_7 : f32 to vector<2x4xf32>
    %9 = arith.maximumf %7, %8 : vector<2x4xf32>
    %10 = vector.extract_strided_slice %9 {offsets = [0, 0], sizes = [1, 4], strides = [1, 1]} : vector<2x4xf32> to vector<1x4xf32>
    %11 = vector.extract_strided_slice %9 {offsets = [1, 0], sizes = [1, 4], strides = [1, 1]} : vector<2x4xf32> to vector<1x4xf32>
    %12 = arith.addf %10, %11 : vector<1x4xf32>
    %c0_8 = arith.constant 0 : index
    %c0_9 = arith.constant 0 : index
    %13 = vector.load %arg2[%c0_8, %c0_9] : memref<4x64xf32, #tpu.memory_space<vmem>>, vector<4x64xf32>
    %cst_10 = arith.constant dense<0.000000e+00> : vector<1x64xf32>
    %14 = tpu.matmul %12, %13, %cst_10 {dimension_numbers = #tpu.dot_dimension_numbers<[1], [0], [0], [1], [0, 0, 1, 1], [], []>} : vector<1x4xf32>, vector<4x64xf32>, vector<1x64xf32> -> vector<1x64xf32>
    %15 = arith.negf %14 : vector<1x64xf32>
    %16 = math.exp %15 : vector<1x64xf32>
    %cst_11 = arith.constant 1.000000e+00 : f32
    %17 = vector.broadcast %cst_11 : f32 to vector<1x64xf32>
    %18 = arith.addf %17, %16 : vector<1x64xf32>
    %19 = arith.divf %17, %18 : vector<1x64xf32>
    %20 = vector.shape_cast %19 : vector<1x64xf32> to vector<1x1x64xf32>
    %c0_12 = arith.constant 0 : index
    %c0_13 = arith.constant 0 : index
    %c0_14 = arith.constant 0 : index
    %21 = vector.load %arg4[%c0_12, %c0_13, %c0_14] : memref<1x1x64xf32, #tpu.memory_space<vmem>>, vector<1x1x64xf32>
    tpu.vector_store %arg4[%c0_12, %c0_13, %c0_14], %20 {strides = array<i32>} : memref<1x1x64xf32, #tpu.memory_space<vmem>>, vector<1x1x64xf32>,
    return
  }
  func.func @transform_0(%arg0: i32) -> (i32, i32) {
    %c0_i32 = arith.constant 0 : i32
    %c0_i32_0 = arith.constant 0 : i32
    %c0_i32_1 = arith.constant 0 : i32
    return %c0_i32, %c0_i32_0 : i32, i32
  }
  func.func @transform_1(%arg0: i32) -> (i32, i32) {
    %c0_i32 = arith.constant 0 : i32
    %c0_i32_0 = arith.constant 0 : i32
    %c0_i32_1 = arith.constant 0 : i32
    return %c0_i32, %c0_i32_0 : i32, i32
  }
  func.func @transform_2(%arg0: i32) -> (i32, i32, i32) {
    %c0_i32 = arith.constant 0 : i32
    %c0_i32_0 = arith.constant 0 : i32
    %c0_i32_1 = arith.constant 0 : i32
    return %arg0, %c0_i32, %c0_i32_0 : i32, i32, i32
  }
  func.func @transform_3(%arg0: i32) -> (i32, i32, i32) {
    %c0_i32 = arith.constant 0 : i32
    %c0_i32_0 = arith.constant 0 : i32
    %c0_i32_1 = arith.constant 0 : i32
    return %arg0, %c0_i32, %c0_i32_0 : i32, i32, i32
  }
}

</mosaic_0001>

<bundles_post_ra>
// kernel: tpu_custom_call.1
= control target key start
LH: loop header
LB: loop body
LE: loop exit
PB: predicated region body
PF: predicated region fallthrough
CT: control target
= control target key end

     0   :  { %8 = vsyncpa [#allocation3], 0  ;;  %s1056_s0 = inlined_call_operand.vmem [shape: f32[64,4], index: 0, kind: input, shape index: {}]   ;;  %s1057_s1 = inlined_call_operand.vmem [shape: f32[4,64], index: 1, kind: input, shape index: {}]   ;;  %s1058_s2 = inlined_call_operand.hbm [shape: f32[2,64,256], index: 2, kind: input, shape index: {}]   ;;  %s1059_s3 = inlined_call_operand.hbm [shape: f32[2,1,64], index: 3, kind: output, shape index: {}]  }
   0x1   :  { %10 = vsyncpa [#allocation3 + $0x1], 0 }
   0x2   :  { %11 = vsyncpa [#allocation4], 0 }
   0x3   :  { %13 = vsyncpa [#allocation4 + $0x1], 0  ;;  %s852_s12 = smov 0   ;;  %s854_s13 = smov 0  }
   0x4   :  { %s856_s14 = smov 0   ;;  %s858_s15 = smov 0  }
   0x5 LB: > { %s873_s16 = sadd.s32 4294967295, %s824_s15   ;;  %s627_s17 = sadd.s32 4294967294, %s824_s15   ;;  %s824_s15 = sphi %s858_s15, %s1074_s15   ;;  %s820_s14 = sphi %s856_s14, %s1073_s14   ;;  %s816_s13 = sphi %s854_s13, %s1072_s13   ;;  %s812_s12 = sphi %s852_s12, %s1071_s12  }
   0x6   : > { %s877_s18 = sadd.s32 1, %s824_s15   ;;  %s68_s19 = sadd.s32 1, %s820_s14 }
   0x7   : > { %s65_s20 = ssub.s32 %s824_s15, %s877_s18  ;;  %p75_p0 = scmp.ne.s32.totalorder %s820_s14, %s816_s13 }
   0x8   : > { %p66_p1 = scmp.eq.s32.totalorder %s65_s20, 0  ;;  %p76_p2 = scmp.eq.s32.totalorder %s824_s15, 0 }
   0x9   : > { %p81_p3 = scmp.ne.s32.totalorder %s816_s13, %s812_s12  ;;  %p82_p4 = scmp.eq.s32.totalorder %s873_s16, 0 }
   0xa   : > { %s889_s21 = scalar_select %p66_p1, %s820_s14, %s68_s19  }
   0xb   : > { %p891_p5 = por %p76_p2, %p75_p0  ;;  %p895_p6 = por %p82_p4, %p81_p3 }
   0xc   : > { %p105_p7 = scmp.eq.s32.totalorder %s873_s16, 1  ;;  %p111_p8 = scmp.eq.s32.totalorder %s627_s17, 1 }
   0xd   : > { %s1063_s23 = scalar_select %p895_p6, 1, 0 }
   0xe   : > { %p690_p10 = scmp.lt.s32.totalorder %s824_s15, 2  ;;  %p902_p11 = por %p105_p7, %p75_p0 }
   0xf   : > { %p906_p12 = por %p111_p8, %p81_p3  ;;  %s137_s26 = sand.u32 1, %s820_s14  }
  0x10   : > { %s1064_s24 = scalar_select %p902_p11, 1, 0 }
  0x11   : > { %s1065_s25 = scalar_select %p906_p12, 1, 0 }
  0x12   : > { %s642_s27 = sshll.u32 %s824_s15, 11  ;;  %s630_s28 = sshll.u32 %s137_s26, 7 }
  0x13   : > { %s915_s4 = scalar_lea.hbm %s1058_s2, %s642_s27  ;;  %s141_s5 = scalar_lea.vmem [#allocation2], %s630_s28 }
  0x14   : > { %s148_s6 = sshll.u32 %s141_s5, 4  ;;  %p919_p13 = pnand %p690_p10, %p891_p5  ;;  %s923_s6 = int_to_ptr.vmem [resolvable:$true] %s148_s6 }
  0x15   : > { %s925_s8 = scalar_lea.sflag [#allocation3], %s137_s26  ;;  %s732_s9 = scalar_lea.hbm %s915_s4, 2048 }
  0x16   : > { %p733_p0 = scmp.ne.s32.totalorder %s915_s4, %s732_s9  ;;  %p734_p1 = pneg %p919_p13 }
  0x17   : > { %s737_s17 = scalar_lea.hbm %s1058_s2, 4096  ;;  %p738_p4 = scmp.lt.s32.totalorder %s915_s4, %s1058_s2 }
  0x18   : > { %p735_p2 = pnand %p734_p1, %p733_p0  ;;  %p739_p5 = scmp.lt.s32.totalorder %s737_s17, %s732_s9 }
  0x1a   : > { %p736_p3 = pneg %p735_p2  ;;  %p740_p7 = por %p739_p5, %p738_p4 }
  0x1c   : > { %p741_p8 = pnand %p740_p7, %p736_p3 }
  0x1e   : > { %744 = shalt.err (!%p741_p8)
}
  0x1f   : > { %s745_s22 = scalar_lea.vmem %s923_s6, 2048  ;;  %s826_s26 = smov [#allocation2]  }
  0x20   : > { %p746_p10 = scmp.ne.s32.totalorder %s923_s6, %s745_s22  ;;  %s750_s27 = sshll.u32 %s826_s26, 4  ;;  %s751_s27 = int_to_ptr.vmem [resolvable:$false] %s750_s27 }
  0x21   : > { %s752_s28 = scalar_lea.vmem %s751_s27, 4096  ;;  %p753_p2 = scmp.lt.s32.totalorder %s923_s6, %s751_s27 }
  0x22   : > { %p748_p9 = pnand %p746_p10, %p734_p1  ;;  %p754_p12 = scmp.lt.s32.totalorder %s752_s28, %s745_s22 }
  0x24   : > { %p749_p0 = pneg %p748_p9  ;;  %p755_p11 = por %p754_p12, %p753_p2 }
  0x26   : > { %p756_p6 = pnand %p755_p11, %p749_p0 }
  0x28   : > { %759 = shalt.err (!%p756_p6)
}
  0x29   : > { %s827_s29 = smov 256   ;;  %s828_s30 = smov 16  }
  0x2a   : > { %685 = dma.hbm_to_vmem [thread:$0]  (!%p919_p13), %s915_s4, 2048, %s923_s6, %s925_s8, %s827_s29, %s827_s29, %s828_s30  }
  0x2b   : > { %p633_p9 = scmp.ge.s32.totalorder %s824_s15, 1  ;;  %p156_p1 = scmp.lt.s32.totalorder %s824_s15, 3 }
  0x2d   : > { %p157_p3 = pnand %p633_p9, %p156_p1 }
  0x2e   : > { %s949_s5 = sand.u32 (!%p157_p3), 1, %s816_s13   ;;  %p1067_p6 = scmp.ne.s32.totalorder (!%p157_p3), %s1063_s23, 0 }
  0x2f   : > { %160 = sbr.rel (%p157_p3) target bundleno = 665 (0x299), region = 32  ;;  %s634_s9 = sshll.u32 (!%p157_p3), %s949_s5, 7 }
  0x30   : > { %s163_s10 = scalar_lea.sflag (!%p157_p3), [#allocation3], %s949_s5  ;;  %s953_s11 = scalar_lea.vmem (!%p157_p3), [#allocation2], %s634_s9 }
  0x34   : > { %803 = dma.done.wait (%p1067_p6), %s163_s10, 2048  }
  0x35   : > { %805 = vsyncadd (%p1067_p6), %s163_s10, 4294965248  ;;  %v192_v0 = vld [vmem:[%s953_s11 + $0x20] sm:$0xff]  ;;  %v193_v1 = vld [vmem:[%s953_s11 + $0x28] sm:$0xff]  ;;  %v829_v32 = vmov 0.0   ;;  %vm830_vm0 = vmmov 0   ;;  %v268_v45 = vlaneseq  ;;  %vm279_vm1 = vcmask 130112  }
  0x36   : > { %v188_v2 = vld [vmem:[%s953_s11] sm:$0xff]  ;;  %v234_v3 = vadd.f32 %v193_v1, %v192_v0  ;;  %v189_v4 = vld [vmem:[%s953_s11 + $0x8] sm:$0xff]  ;;  %v190_v5 = vld [vmem:[%s953_s11 + $0x10] sm:$0xff]  ;;  %v210_v17 = vmax.f32 %v192_v0, %v193_v1  ;;  %654 = vmatprep.subr.mxu0 %v829_v32  ;;  %673 = vmatprep.subr.mxu1 %v829_v32  ;;  %vm286_vm2 = vcmask 195712   ;;  %vm293_vm3 = vcmask 261312   ;;  %s639_s4 = sshll.u32 %s873_s16, 4 }
  0x37   : > { %v191_v6 = vld [vmem:[%s953_s11 + $0x18] sm:$0xff]  ;;  %v228_v7 = vadd.f32 %v189_v4, %v188_v2  ;;  %v204_v8 = vmax.f32 %v188_v2, %v189_v4  ;;  %v194_v10 = vld [vmem:[%s953_s11 + $0x30] sm:$0xff]  ;;  %v196_v14 = vld [vmem:[%s953_s11 + $0x40] sm:$0xff]  ;;  %670 = vmatprep.mubr.msk.f32.mxu0 %vm830_vm0, %v829_v32  ;;  %675 = vmatprep.mubr.msk.f32.mxu1 %vm830_vm0, %v829_v32  ;;  %v269_v48 = vand.u32 127, %v268_v45  ;;  %v271_v52 = vshrl.u32 %v268_v45, 7  ;;  %s187_s6 = scalar_lea.vmem [#allocation5], %s949_s5  ;;  %s1019_s19 = scalar_lea.hbm %s1059_s3, %s639_s4 }
  0x38   : > { %235 = vadd.xlane.f32.xlu1 %v234_v3  ;;  %v231_v9 = vadd.f32 %v191_v6, %v190_v5  ;;  %v195_v11 = vld [vmem:[%s953_s11 + $0x38] sm:$0xff]  ;;  %v207_v13 = vmax.f32 %v190_v5, %v191_v6  ;;  %v197_v15 = vld [vmem:[%s953_s11 + $0x48] sm:$0xff]  ;;  %v198_v18 = vld [vmem:[%s953_s11 + $0x50] sm:$0xff]  ;;  %vm300_vm4 = vcmask 326912   ;;  %vm307_vm5 = vcmask 392512   ;;  %s561_s7 = sshll.u32 %s187_s6, 4  ;;  %s562_s7 = int_to_ptr.vmem [resolvable:$true] %s561_s7 }
  0x39   : > { %229 = vadd.xlane.f32.xlu0 %v228_v7  ;;  %v237_v12 = vadd.f32 %v195_v11, %v194_v10  ;;  %v240_v16 = vadd.f32 %v197_v15, %v196_v14  ;;  %v199_v19 = vld [vmem:[%s953_s11 + $0x58] sm:$0xff]  ;;  %v213_v21 = vmax.f32 %v194_v10, %v195_v11  ;;  %v200_v22 = vld [vmem:[%s953_s11 + $0x60] sm:$0xff]  ;;  %v201_v23 = vld [vmem:[%s953_s11 + $0x68] sm:$0xff]  ;;  %v216_v25 = vmax.f32 %v196_v14, %v197_v15  ;;  %s549_s20 = scalar_lea.sflag [#allocation4], %s949_s5  ;;  %s760_s22 = scalar_lea.vmem %s562_s7, 16 }
  0x3a   : > { %v243_v20 = vadd.f32 %v199_v19, %v198_v18  ;;  %v246_v24 = vadd.f32 %v201_v23, %v200_v22  ;;  %v202_v26 = vld [vmem:[%s953_s11 + $0x70] sm:$0xff]  ;;  %v203_v27 = vld [vmem:[%s953_s11 + $0x78] sm:$0xff]  ;;  %v219_v29 = vmax.f32 %v198_v18, %v199_v19  ;;  %v222_v31 = vmax.f32 %v200_v22, %v201_v23  ;;  %v379_v35 = vld [vmem:[%s1056_s0 + $0x28] sm:$0xff]  ;;  %p761_p11 = scmp.ne.s32.totalorder %s562_s7, %s760_s22  ;;  %p1068_p12 = scmp.ne.s32.totalorder %s1064_s24, 0 }
  0x3b   : > { %v249_v28 = vadd.f32 %v203_v27, %v202_v26  ;;  %v225_v30 = vmax.f32 %v202_v26, %v203_v27  ;;  %v381_v33 = vld [vmem:[%s1056_s0 + $0x38] sm:$0xff]  ;;  %v380_v34 = vld [vmem:[%s1056_s0 + $0x30] sm:$0xff]  ;;  %v378_v36 = vld [vmem:[%s1056_s0 + $0x20] sm:$0xff]  ;;  %v274_v50 = vadd.s32 4294967288, %v269_v48  ;;  %v281_v53 = vadd.s32 4294967280, %v269_v48  ;;  %s831_s26 = smov [#allocation5]  }
  0x3c   : > { %205 = vmax.xlane.f32.xlu1 %v204_v8  ;;  %655 = vmatpush3.msra.mxu0 %v381_v33  ;;  %v377_v37 = vld [vmem:[%s1056_s0 + $0x18] sm:$0xff]  ;;  %v376_v38 = vld [vmem:[%s1056_s0 + $0x10] sm:$0xff]  ;;  %v375_v39 = vld [vmem:[%s1056_s0 + $0x8] sm:$0xff]  ;;  %v288_v57 = vadd.s32 4294967272, %v269_v48  ;;  %v295_v59 = vadd.s32 4294967264, %v269_v48  ;;  %v302_v60 = vadd.s32 4294967256, %v269_v48  ;;  %v272_v61 = vsub.s32 %v269_v48, %v271_v52  ;;  %p762_p13 = pnand %p761_p11, %p1068_p12 }
  0x3d   : > { %232 = vadd.xlane.f32.xlu0 %v231_v9  ;;  %656 = vmatprep.subr.mxu0 %v829_v32  ;;  %v374_v40 = vld [vmem:[%s1056_s0] sm:$0xff]  ;;  %v277_v55 = vsub.s32 %v274_v50, %v271_v52  ;;  %v309_v63 = vadd.s32 4294967248, %v269_v48  ;;  %v284_v0 = vsub.s32 %v281_v53, %v271_v52  ;;  %v316_v2 = vadd.s32 4294967240, %v269_v48  ;;  %s764_s27 = sshll.u32 %s831_s26, 4  ;;  %s765_s27 = int_to_ptr.vmem [resolvable:$false] %s764_s27 }
  0x3e   : > { %657 = vmatpush3.msra.mxu0 %v380_v34  ;;  %v291_v4 = vsub.s32 %v288_v57, %v271_v52  ;;  %v298_v8 = vsub.s32 %v295_v59, %v271_v52  ;;  %v305_v10 = vsub.s32 %v302_v60, %v271_v52  ;;  %vm314_vm6 = vcmask 458112   ;;  %v461_v50 = vld [vmem:[%s1057_s1] sm:$0xf]  ;;  %p763_p4 = pneg %p762_p13  ;;  %s766_s16 = scalar_lea.vmem %s765_s27, 32 }
  0x3f   : > { %658 = vmatprep.subr.mxu0 %v829_v32  ;;  %v312_v14 = vsub.s32 %v309_v63, %v271_v52  ;;  %v319_v18 = vsub.s32 %v316_v2, %v271_v52  ;;  %vm321_vm7 = vcmask 523712   ;;  %vm372_vm8 = vcmask 1040384   ;;  %p767_p5 = scmp.lt.s32.totalorder %s562_s7, %s765_s27  ;;  %p768_p7 = scmp.lt.s32.totalorder %s766_s16, %s760_s22 }
  0x40   : > { %238 = vadd.xlane.f32.xlu1 %v237_v12  ;;  %659 = vmatpush3.msra.mxu0 %v379_v35  ;;  %vm382_vm9 = vcmask 523264   ;;  %vm466_vm10 = vcmask 1043456   ;;  %vm462_vm11 = vcmask 31744   ;;  %vm546_vm12 = vcmask 516096  }
  0x41   : > { %208 = vmax.xlane.f32.xlu0 %v207_v13  ;;  %660 = vmatprep.subr.mxu0 %v829_v32  ;;  %p769_p8 = por %p768_p7, %p767_p5 }
  0x42   : > { %661 = vmatpush3.msra.mxu0 %v378_v36  ;;  %674 = vmatpush3.msk.msra.mxu1 %vm466_vm10, %v461_v50 }
  0x43   : > { %662 = vmatprep.subr.mxu0 %v829_v32  ;;  %p770_p10 = pnand %p769_p8, %p763_p4 }
  0x44   : > { %241 = vadd.xlane.f32.xlu1 %v240_v16  ;;  %663 = vmatpush3.msra.mxu0 %v377_v37 }
  0x45   : > { %211 = vmax.xlane.f32.xlu0 %v210_v17  ;;  %664 = vmatprep.subr.mxu0 %v829_v32 }
  0x46   : > { %665 = vmatpush3.msra.mxu0 %v376_v38 }
  0x47   : > { %666 = vmatprep.subr.mxu0 %v829_v32 }
  0x48   : > { %244 = vadd.xlane.f32.xlu1 %v243_v20  ;;  %667 = vmatpush3.msra.mxu0 %v375_v39 }
  0x49   : > { %214 = vmax.xlane.f32.xlu0 %v213_v21  ;;  %668 = vmatprep.subr.mxu0 %v829_v32 }
  0x4a   : > { %669 = vmatpush3.msra.mxu0 %v374_v40 }
  0x4c   : > { %247 = vadd.xlane.f32.xlu1 %v246_v24 }
  0x4d   : > { %217 = vmax.xlane.f32.xlu0 %v216_v25 }
  0x50   : > { %250 = vadd.xlane.f32.xlu1 %v249_v28 }
  0x51   : > { %220 = vmax.xlane.f32.xlu0 %v219_v29 }
  0x54   : > { %226 = vmax.xlane.f32.xlu1 %v225_v30 }
  0x55   : > { %223 = vmax.xlane.f32.xlu0 %v222_v31 }
  0xc1   : > { %v236_v41 = vpop.xlane.xlu1 %235 }
  0xc2   : > { %v230_v42 = vpop.xlane.xlu0 %229  ;;  %v254_v7 = vmul.f32 0.00390625, %v236_v41 }
  0xc3   : > { %v252_v62 = vmul.f32 0.00390625, %v230_v42 }
  0xc4   : > { %v344_v25 = vrot.slane %v254_v7, %v284_v0 }
  0xc5   : > { %v206_v43 = vpop.xlane.xlu1 %205  ;;  %v335_v11 = vrot.slane %v252_v62, %v272_v61 }
  0xc6   : > { %v233_v44 = vpop.xlane.xlu0 %232  ;;  %v273_v15 = vrot.slane %v206_v43, %v272_v61 }
  0xc7   : > { %v253_v56 = vmul.f32 0.00390625, %v233_v44 }
  0xc9   : > { %v239_v46 = vpop.xlane.xlu1 %238  ;;  %v339_v3 = vrot.slane %v253_v56, %v277_v55 }
  0xca   : > { %v209_v47 = vpop.xlane.xlu0 %208  ;;  %v255_v5 = vmul.f32 0.00390625, %v239_v46 }
  0xcb   : > { %v278_v12 = vrot.slane %v209_v47, %v277_v55  ;;  %v340_v20 = vsel %vm279_vm1, %v339_v3, %v335_v11 }
  0xcc   : > { %v349_v21 = vrot.slane %v255_v5, %v291_v4  ;;  %v345_v31 = vsel %vm286_vm2, %v344_v25, %v340_v20 }
  0xcd   : > { %v242_v49 = vpop.xlane.xlu1 %241  ;;  %v280_v28 = vsel %vm279_vm1, %v278_v12, %v273_v15 }
  0xce   : > { %v212_v51 = vpop.xlane.xlu0 %211  ;;  %v256_v9 = vmul.f32 0.00390625, %v242_v49  ;;  %v350_v35 = vsel %vm293_vm3, %v349_v21, %v345_v31 }
  0xcf   : > { %v285_v16 = vrot.slane %v212_v51, %v284_v0 }
  0xd0   : > { %v354_v26 = vrot.slane %v256_v9, %v298_v8 }
  0xd1   : > { %v245_v54 = vpop.xlane.xlu1 %244  ;;  %v287_v32 = vsel %vm286_vm2, %v285_v16, %v280_v28 }
  0xd2   : > { %v215_v58 = vpop.xlane.xlu0 %214  ;;  %v257_v13 = vmul.f32 0.00390625, %v245_v54  ;;  %v355_v40 = vsel %vm300_vm4, %v354_v26, %v350_v35 }
  0xd3   : > { %v292_v22 = vrot.slane %v215_v58, %v291_v4 }
  0xd4   : > { %v359_v29 = vrot.slane %v257_v13, %v305_v10 }
  0xd5   : > { %v248_v1 = vpop.xlane.xlu1 %247  ;;  %v294_v36 = vsel %vm293_vm3, %v292_v22, %v287_v32 }
  0xd6   : > { %v218_v6 = vpop.xlane.xlu0 %217  ;;  %v258_v17 = vmul.f32 0.00390625, %v248_v1  ;;  %v360_v43 = vsel %vm307_vm5, %v359_v29, %v355_v40 }
  0xd7   : > { %v299_v27 = vrot.slane %v218_v6, %v298_v8 }
  0xd8   : > { %v364_v33 = vrot.slane %v258_v17, %v312_v14 }
  0xd9   : > { %v251_v19 = vpop.xlane.xlu1 %250  ;;  %v301_v41 = vsel %vm300_vm4, %v299_v27, %v294_v36 }
  0xda   : > { %v221_v23 = vpop.xlane.xlu0 %220  ;;  %v259_v24 = vmul.f32 0.00390625, %v251_v19  ;;  %v365_v45 = vsel %vm314_vm6, %v364_v33, %v360_v43 }
  0xdb   : > { %v306_v30 = vrot.slane %v221_v23, %v305_v10 }
  0xdc   : > { %v369_v37 = vrot.slane %v259_v24, %v319_v18 }
  0xdd   : > { %v227_v34 = vpop.xlane.xlu1 %226  ;;  %v308_v44 = vsel %vm307_vm5, %v306_v30, %v301_v41 }
  0xde   : > { %v224_v38 = vpop.xlane.xlu0 %223  ;;  %v320_v39 = vrot.slane %v227_v34, %v319_v18  ;;  %v370_v48 = vsel %vm321_vm7, %v369_v37, %v365_v45 }
  0xdf   : > { %v313_v42 = vrot.slane %v224_v38, %v312_v14 }
  0xe1   : > { %v315_v46 = vsel %vm314_vm6, %v313_v42, %v308_v44 }
  0xe2   : > { %v322_v47 = vsel %vm321_vm7, %v320_v39, %v315_v46 }
  0xe3   : > { %v373_v49 = vsel %vm372_vm8, %v322_v47, %v370_v48 }
  0xe4   : > { %671 = vmatmul.mubr.msk.f32.vlgmr.msra.gmra.mxu0 %vm382_vm9, %v373_v49 }
 0x1a4   : > { %v452_v51 = vpop.f32.mrf.mxu0 }
 0x1a5   : > { %v456_v52 = vmax.f32 %v452_v51, 0.0 }
 0x1a6   : > { %v672_v53 = vpop.f32.mrf.mxu0 }
 0x1a7   : > { %v458_v54 = vrot.slane %v456_v52, 1 }
 0x1a9   : > { %v460_v55 = vadd.f32 %v458_v54, %v456_v52 }
 0x1ab   : > { %676 = vmatmul.mubr.msk.f32.vlgmr.msra.gmra.mxu1 %vm462_vm11, %v460_v55 }
 0x26b   : > { %v536_v56 = vpop.f32.mrf.mxu1 }
 0x26c   : > { %v638_v57 = vmul.f32 -1.442695, %v536_v56 }
 0x26d   : > { %v677_v58 = vpop.f32.mrf.mxu1 }
 0x26e   : > { %728 = vpow2.f32 %v638_v57 }
 0x27b   : > { %v729_v59 = vpop.eup %728 }
 0x27c   : > { %v543_v60 = vadd.f32 1.0, %v729_v59 }
 0x27e   : > { %730 = vrcp.f32 %v543_v60 }
 0x28b   : > { %v731_v61 = vpop.eup %730 }
 0x28c   : > { %547 = vst.msk [vmem:[%s187_s6] sm:$0x1] %vm546_vm12, %v731_v61 }
 0x28d   : > { %773 = shalt.err (!%p770_p10)
}
 0x28e   : > { %s774_s28 = scalar_lea.hbm %s1019_s19, 16  ;;  %s778_s30 = scalar_lea.hbm %s1059_s3, 32 }
 0x28f   : > { %p775_p0 = scmp.ne.s32.totalorder %s1019_s19, %s774_s28  ;;  %p779_p1 = scmp.lt.s32.totalorder %s1019_s19, %s1059_s3 }
 0x290   : > { %p780_p3 = scmp.lt.s32.totalorder %s778_s30, %s774_s28 }
 0x291   : > { %p776_p2 = pnand %p775_p0, %p1068_p12 }
 0x292   : > { %p781_p6 = por %p780_p3, %p779_p1 }
 0x293   : > { %p777_p9 = pneg %p776_p2 }
 0x295   : > { %p782_p11 = pnand %p781_p6, %p777_p9 }
 0x297   : > { %785 = shalt.err (!%p782_p11)
}
 0x298   : > { %680 = dma.vmem_to_hbm [thread:$0]  (%p1068_p12), %s562_s7, 16, %s1019_s19, %s549_s20  }
 0x299 PF: > { %s573_s11 = sand.u32 1, %s812_s12   ;;  %p1069_p13 = scmp.ne.s32.totalorder %s1065_s25, 0 }
 0x29a   : > { %p1070_p4 = scmp.ge.s32.totalorder %s824_s15, 2  ;;  %s574_s23 = scalar_lea.sflag [#allocation4], %s573_s11 }
 0x29c   : > { %p687_p5 = pnand %p1070_p4, %p1069_p13 }
 0x29e   : > { %p688_p7 = pneg %p687_p5 }
 0x2a0   : > { %807 = dma.done.wait (%p688_p7), %s574_s23, 16  }
 0x2a1   : > { %809 = vsyncadd (%p688_p7), %s574_s23, 4294967280  ;;  %p16_p8 = scmp.ge.s32.totalorder %s877_s18, 4   ;;  %s1071_s12 = smov %s816_s13 }
 0x2a2   : > { %s1072_s13 = smov %s820_s14  ;;  %s1073_s14 = smov %s889_s21 }
 0x2a3   : > { %s1074_s15 = smov %s877_s18  ;;  %18 = sbr.rel (!%p16_p8) target bundleno = 5 (0x5), region = 77 }
 0x2a8   :  { %578 = vsyncpa [#allocation3], 1 }
 0x2a9   :  { %580 = vsyncpa [#allocation3 + $0x1], 1 }
 0x2aa   :  { %581 = vsyncpa [#allocation4], 1 }
 0x2ab   :  { %583 = vsyncpa [#allocation4 + $0x1], 1 }

</bundles_post_ra>
